<compile_context>
chip_gen: v5e
topology: v5e:2x2
jax: 0.10.0
libtpu: 0.0.40
codegen_flags: <defaults>
</compile_context>

<pallas_src>
import functools
import math

import jax
import jax.numpy as jnp
from jax import lax
from jax.experimental import pallas as pl
from jax.experimental.pallas import tpu as pltpu


NEG_INF = -1e30                       # finite sentinel: avoids -inf - -inf = NaN
VMEM_LIMIT = 48 * 1024 * 1024         # safe on v5e/v6e (128 MiB) and v7x (64 MiB)


def _fit_tile(dim, target, align):
    """Largest tile <= min(target, dim) that divides dim and is either a
    multiple of `align` or the full dim (satisfies the (8,128) block rule)."""
    t = min(target, dim)
    if dim % t == 0 and (t % align == 0 or t == dim):
        return t
    t = (t // align) * align
    while t > 0:
        if dim % t == 0:
            return t
        t -= align
    return dim


# ----------------------------- linear kernel --------------------------------
def linear_kernel(x_ref, w_ref, b_ref, o_ref, acc_ref):
    """One (tm, tn) output tile, reduced over the K grid axis (axis 2).

    x_ref: (tm, tk); w_ref: (tn, tk) torch-layout weight tile (contract dim 1
    of both -> no transpose anywhere); b_ref: (1, tn); acc_ref: f32 (tm, tn).
    """
    @pl.when(pl.program_id(2) == 0)
    def _init():
        acc_ref[...] = jnp.zeros_like(acc_ref)

    acc_ref[...] += lax.dot_general(
        x_ref[...], w_ref[...],
        dimension_numbers=(((1,), (1,)), ((), ())),
        preferred_element_type=jnp.float32)

    @pl.when(pl.program_id(2) == pl.num_programs(2) - 1)
    def _writeback():
        o_ref[...] = (acc_ref[...] + b_ref[...].astype(jnp.float32)).astype(o_ref.dtype)


def linear(x, w, b, *, tm=256, tn=256, tk=512):
    """x: (M, K); w: (N, K) torch-style weight; b: (N,). Returns (M, N)."""
    M, K = x.shape
    N = w.shape[0]
    tm = _fit_tile(M, tm, 8)
    tn = _fit_tile(N, tn, 128)
    tk = _fit_tile(K, tk, 128)
    grid = (M // tm, N // tn, K // tk)

    return pl.pallas_call(
        linear_kernel,
        out_shape=jax.ShapeDtypeStruct((M, N), x.dtype),
        grid_spec=pltpu.PrefetchScalarGridSpec(
            num_scalar_prefetch=0,
            grid=grid,
            in_specs=[
                pl.BlockSpec((tm, tk), lambda i, j, k: (i, k)),
                pl.BlockSpec((tn, tk), lambda i, j, k: (j, k)),
                pl.BlockSpec((1, tn), lambda i, j, k: (0, j)),
            ],
            out_specs=pl.BlockSpec((tm, tn), lambda i, j, k: (i, j)),
            scratch_shapes=[pltpu.VMEM((tm, tn), jnp.float32)],
        ),
        compiler_params=pltpu.CompilerParams(
            dimension_semantics=("parallel", "parallel", "arbitrary"),
            vmem_limit_bytes=VMEM_LIMIT,
        ),
    )(x, w, b.reshape(1, N))


# --------------------------- attention kernel --------------------------------
def gqa_attn_kernel(q_ref, k_ref, v_ref, o_ref, m_sc, l_sc, acc_sc,
                    *, scale, group, tq, tkv):
    """Flash-style causal attention for one (batch, kv-head, q-tile) triple.

    q_ref : (group, tq, D) -- all query heads sharing this KV head; folded into
                              the MXU M dimension inside the kernel.
    k_ref : (tkv, D); v_ref : (tkv, D)
    o_ref : (group, tq, D)
    m_sc/l_sc : (group*tq, 1) f32   running max / running sum
    acc_sc    : (group*tq, D) f32   running (unnormalized) output
    """
    qi = pl.program_id(2)
    ki = pl.program_id(3)
    d = q_ref.shape[-1]

    @pl.when(ki == 0)
    def _init():
        m_sc[...] = jnp.full_like(m_sc, NEG_INF)
        l_sc[...] = jnp.zeros_like(l_sc)
        acc_sc[...] = jnp.zeros_like(acc_sc)

    # Causal: skip KV tiles that lie entirely above the diagonal
    # (K/V DMA still happens, but all VALU/MXU work is elided).
    @pl.when(ki * tkv <= qi * tq + (tq - 1))
    def _compute():
        q = q_ref[...].reshape(group * tq, d)     # fold heads into M
        k = k_ref[...]
        v = v_ref[...]

        # (group*tq, tkv) scores; contraction over D of both operands,
        # no in-kernel transpose -> MXU fed directly.
        s = lax.dot_general(q, k, (((1,), (1,)), ((), ())),
                            preferred_element_type=jnp.float32) * scale

        # Per-tile causal mask from small (group, tq, tkv) iotas + global offsets.
        q_pos = qi * tq + lax.broadcasted_iota(jnp.int32, (group, tq, tkv), 1)
        k_pos = ki * tkv + lax.broadcasted_iota(jnp.int32, (group, tq, tkv), 2)
        mask = (k_pos <= q_pos).reshape(group * tq, tkv)
        s = jnp.where(mask, s, NEG_INF)

        # Online softmax update.
        m_prev = m_sc[...]
        m_new = jnp.maximum(m_prev, jnp.max(s, axis=-1, keepdims=True))
        alpha = jnp.exp(m_prev - m_new)
        p = jnp.exp(s - m_new)

        l_sc[...] = alpha * l_sc[...] + jnp.sum(p, axis=-1, keepdims=True)
        acc_sc[...] = alpha * acc_sc[...] + lax.dot_general(
            p.astype(v.dtype), v, (((1,), (0,)), ((), ())),
            preferred_element_type=jnp.float32)
        m_sc[...] = m_new

    @pl.when(ki == pl.num_programs(3) - 1)
    def _finalize():
        # Normalization deferred to the epilogue: one reciprocal per Q tile.
        # (approx=True would move it to the EUP slot at ~1e-3 rel. error;
        #  kept exact to hold the f32 reference tolerance.)
        inv_l = pl.reciprocal(l_sc[...], approx=False)
        out = (acc_sc[...] * inv_l).reshape(group, tq, d)
        o_ref[...] = out.astype(o_ref.dtype)


def gqa_attention(q, k, v, *, tq=128, tkv=256):
    """q: (B, Hkv, G, S, D); k, v: (B, Hkv, S, D). Returns (B, Hkv, G, S, D)."""
    B, Hkv, G, S, D = q.shape
    scale = 1.0 / math.sqrt(D)
    tq = _fit_tile(S, tq, 8)
    tkv = _fit_tile(S, tkv, 8)
    grid = (B, Hkv, S // tq, S // tkv)

    sq = pl.Squeezed()
    q_spec = pl.BlockSpec((sq, sq, G, tq, D), lambda b, h, qi, ki: (b, h, 0, qi, 0))
    kv_spec = pl.BlockSpec((sq, sq, tkv, D), lambda b, h, qi, ki: (b, h, ki, 0))
    o_spec = pl.BlockSpec((sq, sq, G, tq, D), lambda b, h, qi, ki: (b, h, 0, qi, 0))

    kernel = functools.partial(gqa_attn_kernel, scale=scale, group=G, tq=tq, tkv=tkv)
    return pl.pallas_call(
        kernel,
        out_shape=jax.ShapeDtypeStruct((B, Hkv, G, S, D), q.dtype),
        grid_spec=pltpu.PrefetchScalarGridSpec(
            num_scalar_prefetch=0,
            grid=grid,
            in_specs=[q_spec, kv_spec, kv_spec],
            out_specs=o_spec,
            scratch_shapes=[
                pltpu.VMEM((G * tq, 1), jnp.float32),   # running max
                pltpu.VMEM((G * tq, 1), jnp.float32),   # running sum
                pltpu.VMEM((G * tq, D), jnp.float32),   # running output
            ],
        ),
        compiler_params=pltpu.CompilerParams(
            dimension_semantics=("parallel", "parallel", "parallel", "arbitrary"),
            vmem_limit_bytes=VMEM_LIMIT,
        ),
    )(q, k, v)


# ------------------------------ full forward ---------------------------------
def gqa_forward(x, params, num_heads, num_kv_heads):
    B, S, E = x.shape
    D = E // num_heads
    G = num_heads // num_kv_heads
    kvE = E // G

    # Fused q/k/v projection: one pallas_call, x read from HBM once.
    w_qkv = jnp.concatenate([params["wq"], params["wk"], params["wv"]], axis=0)
    b_qkv = jnp.concatenate([params["bq"], params["bk"], params["bv"]], axis=0)

    x2 = x.reshape(B * S, E)
    qkv = linear(x2, w_qkv, b_qkv)                      # (B*S, E + 2*kvE)
    q = qkv[:, :E]
    k = qkv[:, E:E + kvE]
    v = qkv[:, E + kvE:]

    # Head h uses kv head h // G -> group query heads by their shared kv head.
    q = q.reshape(B, S, num_kv_heads, G, D).transpose(0, 2, 3, 1, 4)  # (B,Hkv,G,S,D)
    k = k.reshape(B, S, num_kv_heads, D).transpose(0, 2, 1, 3)        # (B,Hkv,S,D)
    v = v.reshape(B, S, num_kv_heads, D).transpose(0, 2, 1, 3)

    attn = gqa_attention(q, k, v)                                     # (B,Hkv,G,S,D)
    attn = attn.transpose(0, 3, 1, 2, 4).reshape(B * S, E)            # (B,S,H,D)->flat

    out = linear(attn, params["wo"], params["bo"])
    return out.reshape(B, S, E)


# ------------------------- deterministic init & ref ---------------------------
def init_params(key, embed_dim, num_heads, num_kv_heads, dtype=jnp.float32):
    group = num_heads // num_kv_heads
    kv_dim = embed_dim // group
    ks = jax.random.split(key, 8)

    def lin(kw, kb, out_f, in_f):
        bound = 1.0 / math.sqrt(in_f)
        w = jax.random.uniform(kw, (out_f, in_f), dtype, -bound, bound)
        b = jax.random.uniform(kb, (out_f,), dtype, -bound, bound)
        return w, b

    wq, bq = lin(ks[0], ks[1], embed_dim, embed_dim)
    wk, bk = lin(ks[2], ks[3], kv_dim, embed_dim)
    wv, bv = lin(ks[4], ks[5], kv_dim, embed_dim)
    wo, bo = lin(ks[6], ks[7], embed_dim, embed_dim)
    return dict(wq=wq, bq=bq, wk=wk, bk=bk, wv=wv, bv=bv, wo=wo, bo=bo)


def gqa_reference(x, params, num_heads, num_kv_heads):
    """Pure-jnp reference matching the PyTorch forward (eval mode)."""
    B, S, E = x.shape
    head_dim = E // num_heads
    group = num_heads // num_kv_heads
    q = x @ params["wq"].T + params["bq"]
    k = x @ params["wk"].T + params["bk"]
    v = x @ params["wv"].T + params["bv"]
    q = q.reshape(B, S, num_heads, head_dim).transpose(0, 2, 1, 3)
    k = k.reshape(B, S, num_kv_heads, head_dim).transpose(0, 2, 1, 3)
    v = v.reshape(B, S, num_kv_heads, head_dim).transpose(0, 2, 1, 3)
    k = jnp.repeat(k, group, axis=1)
    v = jnp.repeat(v, group, axis=1)
    s = jnp.einsum("bhqd,bhkd->bhqk", q, k) / math.sqrt(head_dim)
    mask = jnp.tril(jnp.ones((S, S), dtype=bool))
    s = jnp.where(mask[None, None], s, -jnp.inf)
    p = jax.nn.softmax(s, axis=-1)
    o = jnp.einsum("bhqk,bhkd->bhqd", p, v)
    o = o.transpose(0, 2, 1, 3).reshape(B, S, E)
    return o @ params["wo"].T + params["bo"]


if __name__ == "__main__":
    B, S, E = 2, 8, 32
    num_heads, num_kv_heads = 4, 2
    dropout = 0.1  # identity in eval mode

    key = jax.random.PRNGKey(0)
    kx, kp = jax.random.split(key)
    x = jax.random.normal(kx, (B, S, E), dtype=jnp.float32)
    params = init_params(kp, E, num_heads, num_kv_heads)

    fwd = jax.jit(gqa_forward, static_argnums=(2, 3))
    out = fwd(x, params, num_heads, num_kv_heads)
    out = jax.block_until_ready(out)

    ref = gqa_reference(x, params, num_heads, num_kv_heads)
    assert out.shape == (B, S, E)
    assert jnp.allclose(out, ref, atol=1e-4, rtol=1e-4), "mismatch vs reference"

    print("KERNEL_OK")
</pallas_src>

<mosaic_0001>
module attributes {stable_mosaic.version = 11 : i64} {
  func.func @linear_kernel(%arg0: i32, %arg1: i32, %arg2: i32, %arg3: memref<16x32xf32, #tpu.memory_space<vmem>>, %arg4: memref<64x32xf32, #tpu.memory_space<vmem>>, %arg5: memref<1x64xf32, #tpu.memory_space<vmem>>, %arg6: memref<16x64xf32, #tpu.memory_space<vmem>>, %arg7: memref<16x64xf32, #tpu.memory_space<vmem>>) attributes {dimension_semantics = [#tpu.dimension_semantics<parallel>, #tpu.dimension_semantics<parallel>, #tpu.dimension_semantics<arbitrary>], iteration_bounds = array<i64: 1, 1, 1>, scalar_prefetch = 0 : i64, scratch_operands = 1 : i64, tpu.core_type = #tpu.core_type<tc>, window_params = [{transform_indices = @transform_0, window_bounds = array<i64: 16, 32>}, {transform_indices = @transform_1, window_bounds = array<i64: 64, 32>}, {transform_indices = @transform_2, window_bounds = array<i64: 1, 64>}, {transform_indices = @transform_3, window_bounds = array<i64: 16, 64>}]} {
    %c0_i32 = arith.constant 0 : i32
    %0 = arith.cmpi eq, %arg2, %c0_i32 : i32
    %1 = arith.extui %0 : i1 to i32
    %c0_i32_0 = arith.constant 0 : i32
    %2 = arith.cmpi ne, %1, %c0_i32_0 : i32
    scf.if %2 {
      %cst_10 = arith.constant 0.000000e+00 : f32
      %12 = vector.broadcast %cst_10 : f32 to vector<16x64xf32>
      %c0_11 = arith.constant 0 : index
      %c0_12 = arith.constant 0 : index
      %13 = vector.load %arg7[%c0_11, %c0_12] : memref<16x64xf32, #tpu.memory_space<vmem>>, vector<16x64xf32>
      tpu.vector_store %arg7[%c0_11, %c0_12], %12 {strides = array<i32>} : memref<16x64xf32, #tpu.memory_space<vmem>>, vector<16x64xf32>,
    } else {
    }
    %c0 = arith.constant 0 : index
    %c0_1 = arith.constant 0 : index
    %3 = vector.load %arg7[%c0, %c0_1] : memref<16x64xf32, #tpu.memory_space<vmem>>, vector<16x64xf32>
    %c0_2 = arith.constant 0 : index
    %c0_3 = arith.constant 0 : index
    %4 = vector.load %arg3[%c0_2, %c0_3] : memref<16x32xf32, #tpu.memory_space<vmem>>, vector<16x32xf32>
    %c0_4 = arith.constant 0 : index
    %c0_5 = arith.constant 0 : index
    %5 = vector.load %arg4[%c0_4, %c0_5] : memref<64x32xf32, #tpu.memory_space<vmem>>, vector<64x32xf32>
    %cst = arith.constant dense<0.000000e+00> : vector<16x64xf32>
    %6 = tpu.matmul %4, %5, %cst {dimension_numbers = #tpu.dot_dimension_numbers<[1], [1], [0], [0], [0, 0, 1, 0], [], []>} : vector<16x32xf32>, vector<64x32xf32>, vector<16x64xf32> -> vector<16x64xf32>
    %7 = arith.addf %3, %6 : vector<16x64xf32>
    %c0_6 = arith.constant 0 : index
    %c0_7 = arith.constant 0 : index
    %8 = vector.load %arg7[%c0_6, %c0_7] : memref<16x64xf32, #tpu.memory_space<vmem>>, vector<16x64xf32>
    tpu.vector_store %arg7[%c0_6, %c0_7], %7 {strides = array<i32>} : memref<16x64xf32, #tpu.memory_space<vmem>>, vector<16x64xf32>,
    %c0_i32_8 = arith.constant 0 : i32
    %9 = arith.cmpi eq, %arg2, %c0_i32_8 : i32
    %10 = arith.extui %9 : i1 to i32
    %c0_i32_9 = arith.constant 0 : i32
    %11 = arith.cmpi ne, %10, %c0_i32_9 : i32
    scf.if %11 {
      %c0_10 = arith.constant 0 : index
      %c0_11 = arith.constant 0 : index
      %12 = vector.load %arg7[%c0_10, %c0_11] : memref<16x64xf32, #tpu.memory_space<vmem>>, vector<16x64xf32>
      %c0_12 = arith.constant 0 : index
      %c0_13 = arith.constant 0 : index
      %13 = vector.load %arg5[%c0_12, %c0_13] : memref<1x64xf32, #tpu.memory_space<vmem>>, vector<1x64xf32>
      %14 = vector.broadcast %13 : vector<1x64xf32> to vector<16x64xf32>
      %15 = arith.addf %12, %14 : vector<16x64xf32>
      %c0_14 = arith.constant 0 : index
      %c0_15 = arith.constant 0 : index
      %16 = vector.load %arg6[%c0_14, %c0_15] : memref<16x64xf32, #tpu.memory_space<vmem>>, vector<16x64xf32>
      tpu.vector_store %arg6[%c0_14, %c0_15], %15 {strides = array<i32>} : memref<16x64xf32, #tpu.memory_space<vmem>>, vector<16x64xf32>,
    } else {
    }
    return
  }
  func.func @transform_0(%arg0: i32, %arg1: i32, %arg2: i32) -> (i32, i32) {
    %c0_i32 = arith.constant 0 : i32
    return %arg0, %arg2 : i32, i32
  }
  func.func @transform_1(%arg0: i32, %arg1: i32, %arg2: i32) -> (i32, i32) {
    %c0_i32 = arith.constant 0 : i32
    return %arg1, %arg2 : i32, i32
  }
  func.func @transform_2(%arg0: i32, %arg1: i32, %arg2: i32) -> (i32, i32) {
    %c0_i32 = arith.constant 0 : i32
    %c0_i32_0 = arith.constant 0 : i32
    return %c0_i32, %arg1 : i32, i32
  }
  func.func @transform_3(%arg0: i32, %arg1: i32, %arg2: i32) -> (i32, i32) {
    %c0_i32 = arith.constant 0 : i32
    return %arg0, %arg1 : i32, i32
  }
}

module attributes {stable_mosaic.version = 11 : i64} {
  func.func @gqa_attn_kernel(%arg0: i32, %arg1: i32, %arg2: i32, %arg3: i32, %arg4: memref<1x1x2x8x8xf32, #tpu.memory_space<vmem>>, %arg5: memref<1x1x8x8xf32, #tpu.memory_space<vmem>>, %arg6: memref<1x1x8x8xf32, #tpu.memory_space<vmem>>, %arg7: memref<1x1x2x8x8xf32, #tpu.memory_space<vmem>>, %arg8: memref<16x1xf32, #tpu.memory_space<vmem>>, %arg9: memref<16x1xf32, #tpu.memory_space<vmem>>, %arg10: memref<16x8xf32, #tpu.memory_space<vmem>>) attributes {dimension_semantics = [#tpu.dimension_semantics<parallel>, #tpu.dimension_semantics<parallel>, #tpu.dimension_semantics<parallel>, #tpu.dimension_semantics<arbitrary>], iteration_bounds = array<i64: 2, 2, 1, 1>, scalar_prefetch = 0 : i64, scratch_operands = 3 : i64, tpu.core_type = #tpu.core_type<tc>, window_params = [{transform_indices = @transform_0, window_bounds = array<i64: 1, 1, 2, 8, 8>}, {transform_indices = @transform_1, window_bounds = array<i64: 1, 1, 8, 8>}, {transform_indices = @transform_2, window_bounds = array<i64: 1, 1, 8, 8>}, {transform_indices = @transform_3, window_bounds = array<i64: 1, 1, 2, 8, 8>}]} {
    %c0_i32 = arith.constant 0 : i32
    %0 = arith.cmpi eq, %arg3, %c0_i32 : i32
    %1 = arith.extui %0 : i1 to i32
    %c0_i32_0 = arith.constant 0 : i32
    %2 = arith.cmpi ne, %1, %c0_i32_0 : i32
    scf.if %2 {
      %cst = arith.constant -1.000000e+30 : f32
      %12 = vector.broadcast %cst : f32 to vector<16x1xf32>
      %c0 = arith.constant 0 : index
      %c0_5 = arith.constant 0 : index
      %13 = vector.load %arg8[%c0, %c0_5] : memref<16x1xf32, #tpu.memory_space<vmem>>, vector<16x1xf32>
      tpu.vector_store %arg8[%c0, %c0_5], %12 {strides = array<i32>} : memref<16x1xf32, #tpu.memory_space<vmem>>, vector<16x1xf32>,
      %cst_6 = arith.constant 0.000000e+00 : f32
      %14 = vector.broadcast %cst_6 : f32 to vector<16x1xf32>
      %c0_7 = arith.constant 0 : index
      %c0_8 = arith.constant 0 : index
      %15 = vector.load %arg9[%c0_7, %c0_8] : memref<16x1xf32, #tpu.memory_space<vmem>>, vector<16x1xf32>
      tpu.vector_store %arg9[%c0_7, %c0_8], %14 {strides = array<i32>} : memref<16x1xf32, #tpu.memory_space<vmem>>, vector<16x1xf32>,
      %cst_9 = arith.constant 0.000000e+00 : f32
      %16 = vector.broadcast %cst_9 : f32 to vector<16x8xf32>
      %c0_10 = arith.constant 0 : index
      %c0_11 = arith.constant 0 : index
      %17 = vector.load %arg10[%c0_10, %c0_11] : memref<16x8xf32, #tpu.memory_space<vmem>>, vector<16x8xf32>
      tpu.vector_store %arg10[%c0_10, %c0_11], %16 {strides = array<i32>} : memref<16x8xf32, #tpu.memory_space<vmem>>, vector<16x8xf32>,
    } else {
    }
    %c8_i32 = arith.constant 8 : i32
    %3 = arith.muli %arg3, %c8_i32 : i32
    %c8_i32_1 = arith.constant 8 : i32
    %4 = arith.muli %arg2, %c8_i32_1 : i32
    %c7_i32 = arith.constant 7 : i32
    %5 = arith.addi %4, %c7_i32 : i32
    %6 = arith.cmpi sle, %3, %5 : i32
    %7 = arith.extui %6 : i1 to i32
    %c0_i32_2 = arith.constant 0 : i32
    %8 = arith.cmpi ne, %7, %c0_i32_2 : i32
    scf.if %8 {
      %c0 = arith.constant 0 : index
      %c0_5 = arith.constant 0 : index
      %c0_6 = arith.constant 0 : index
      %c0_7 = arith.constant 0 : index
      %c0_8 = arith.constant 0 : index
      %12 = vector.load %arg4[%c0, %c0_5, %c0_6, %c0_7, %c0_8] : memref<1x1x2x8x8xf32, #tpu.memory_space<vmem>>, vector<1x1x2x8x8xf32>
      %13 = vector.shape_cast %12 : vector<1x1x2x8x8xf32> to vector<2x8x8xf32>
      %14 = vector.shape_cast %13 : vector<2x8x8xf32> to vector<16x8xf32>
      %c0_9 = arith.constant 0 : index
      %c0_10 = arith.constant 0 : index
      %c0_11 = arith.constant 0 : index
      %c0_12 = arith.constant 0 : index
      %15 = vector.load %arg5[%c0_9, %c0_10, %c0_11, %c0_12] : memref<1x1x8x8xf32, #tpu.memory_space<vmem>>, vector<1x1x8x8xf32>
      %16 = vector.shape_cast %15 : vector<1x1x8x8xf32> to vector<8x8xf32>
      %c0_13 = arith.constant 0 : index
      %c0_14 = arith.constant 0 : index
      %c0_15 = arith.constant 0 : index
      %c0_16 = arith.constant 0 : index
      %17 = vector.load %arg6[%c0_13, %c0_14, %c0_15, %c0_16] : memref<1x1x8x8xf32, #tpu.memory_space<vmem>>, vector<1x1x8x8xf32>
      %18 = vector.shape_cast %17 : vector<1x1x8x8xf32> to vector<8x8xf32>
      %cst = arith.constant dense<0.000000e+00> : vector<16x8xf32>
      %19 = tpu.matmul %14, %16, %cst {dimension_numbers = #tpu.dot_dimension_numbers<[1], [1], [0], [0], [0, 0, 1, 0], [], []>} : vector<16x8xf32>, vector<8x8xf32>, vector<16x8xf32> -> vector<16x8xf32>
      %cst_17 = arith.constant 0.353553385 : f32
      %20 = vector.broadcast %cst_17 : f32 to vector<16x8xf32>
      %21 = arith.mulf %19, %20 : vector<16x8xf32>
      %c8_i32_18 = arith.constant 8 : i32
      %22 = arith.muli %arg2, %c8_i32_18 : i32
      %23 = tpu.iota {dimensions = array<i32: 1>} : vector<2x8x8xi32>
      %24 = vector.broadcast %22 : i32 to vector<2x8x8xi32>
      %25 = arith.addi %24, %23 : vector<2x8x8xi32>
      %c8_i32_19 = arith.constant 8 : i32
      %26 = arith.muli %arg3, %c8_i32_19 : i32
      %27 = tpu.iota {dimensions = array<i32: 2>} : vector<2x8x8xi32>
      %28 = vector.broadcast %26 : i32 to vector<2x8x8xi32>
      %29 = arith.addi %28, %27 : vector<2x8x8xi32>
      %30 = arith.cmpi sle, %29, %25 : vector<2x8x8xi32>
      %31 = vector.shape_cast %30 : vector<2x8x8xi1> to vector<16x8xi1>
      %cst_20 = arith.constant -1.000000e+30 : f32
      %32 = vector.broadcast %cst_20 : f32 to vector<16x8xf32>
      %33 = arith.select %31, %21, %32 : vector<16x8xi1>, vector<16x8xf32>
      %c0_21 = arith.constant 0 : index
      %c0_22 = arith.constant 0 : index
      %34 = vector.load %arg8[%c0_21, %c0_22] : memref<16x1xf32, #tpu.memory_space<vmem>>, vector<16x1xf32>
      %cst_23 = arith.constant dense<0xFF800000> : vector<16xf32>
      %35 = vector.multi_reduction <maximumf>, %33, %cst_23 [1] : vector<16x8xf32> to vector<16xf32>
      %36 = vector.shape_cast %35 : vector<16xf32> to vector<16x1xf32>
      %37 = arith.maximumf %34, %36 : vector<16x1xf32>
      %38 = arith.subf %34, %37 : vector<16x1xf32>
      %39 = math.exp %38 : vector<16x1xf32>
      %40 = vector.broadcast %37 : vector<16x1xf32> to vector<16x8xf32>
      %41 = arith.subf %33, %40 : vector<16x8xf32>
      %42 = math.exp %41 : vector<16x8xf32>
      %c0_24 = arith.constant 0 : index
      %c0_25 = arith.constant 0 : index
      %43 = vector.load %arg9[%c0_24, %c0_25] : memref<16x1xf32, #tpu.memory_space<vmem>>, vector<16x1xf32>
      %44 = arith.mulf %39, %43 : vector<16x1xf32>
      %cst_26 = arith.constant dense<0.000000e+00> : vector<16xf32>
      %45 = vector.multi_reduction <add>, %42, %cst_26 [1] : vector<16x8xf32> to vector<16xf32>
      %46 = vector.shape_cast %45 : vector<16xf32> to vector<16x1xf32>
      %47 = arith.addf %44, %46 : vector<16x1xf32>
      %c0_27 = arith.constant 0 : index
      %c0_28 = arith.constant 0 : index
      %48 = vector.load %arg9[%c0_27, %c0_28] : memref<16x1xf32, #tpu.memory_space<vmem>>, vector<16x1xf32>
      tpu.vector_store %arg9[%c0_27, %c0_28], %47 {strides = array<i32>} : memref<16x1xf32, #tpu.memory_space<vmem>>, vector<16x1xf32>,
      %c0_29 = arith.constant 0 : index
      %c0_30 = arith.constant 0 : index
      %49 = vector.load %arg10[%c0_29, %c0_30] : memref<16x8xf32, #tpu.memory_space<vmem>>, vector<16x8xf32>
      %50 = vector.broadcast %39 : vector<16x1xf32> to vector<16x8xf32>
      %51 = arith.mulf %50, %49 : vector<16x8xf32>
      %cst_31 = arith.constant dense<0.000000e+00> : vector<16x8xf32>
      %52 = tpu.matmul %42, %18, %cst_31 {dimension_numbers = #tpu.dot_dimension_numbers<[1], [0], [0], [1], [0, 0, 1, 1], [], []>} : vector<16x8xf32>, vector<8x8xf32>, vector<16x8xf32> -> vector<16x8xf32>
      %53 = arith.addf %51, %52 : vector<16x8xf32>
      %c0_32 = arith.constant 0 : index
      %c0_33 = arith.constant 0 : index
      %54 = vector.load %arg10[%c0_32, %c0_33] : memref<16x8xf32, #tpu.memory_space<vmem>>, vector<16x8xf32>
      tpu.vector_store %arg10[%c0_32, %c0_33], %53 {strides = array<i32>} : memref<16x8xf32, #tpu.memory_space<vmem>>, vector<16x8xf32>,
      %c0_34 = arith.constant 0 : index
      %c0_35 = arith.constant 0 : index
      %55 = vector.load %arg8[%c0_34, %c0_35] : memref<16x1xf32, #tpu.memory_space<vmem>>, vector<16x1xf32>
      tpu.vector_store %arg8[%c0_34, %c0_35], %37 {strides = array<i32>} : memref<16x1xf32, #tpu.memory_space<vmem>>, vector<16x1xf32>,
    } else {
    }
    %c0_i32_3 = arith.constant 0 : i32
    %9 = arith.cmpi eq, %arg3, %c0_i32_3 : i32
    %10 = arith.extui %9 : i1 to i32
    %c0_i32_4 = arith.constant 0 : i32
    %11 = arith.cmpi ne, %10, %c0_i32_4 : i32
    scf.if %11 {
      %c0 = arith.constant 0 : index
      %c0_5 = arith.constant 0 : index
      %12 = vector.load %arg9[%c0, %c0_5] : memref<16x1xf32, #tpu.memory_space<vmem>>, vector<16x1xf32>
      %13 = tpu.reciprocal %12 : vector<16x1xf32> -> vector<16x1xf32>
      %c0_6 = arith.constant 0 : index
      %c0_7 = arith.constant 0 : index
      %14 = vector.load %arg10[%c0_6, %c0_7] : memref<16x8xf32, #tpu.memory_space<vmem>>, vector<16x8xf32>
      %15 = vector.broadcast %13 : vector<16x1xf32> to vector<16x8xf32>
      %16 = arith.mulf %14, %15 : vector<16x8xf32>
      %17 = vector.shape_cast %16 : vector<16x8xf32> to vector<2x8x8xf32>
      %c0_8 = arith.constant 0 : index
      %c0_9 = arith.constant 0 : index
      %c0_10 = arith.constant 0 : index
      %c0_11 = arith.constant 0 : index
      %c0_12 = arith.constant 0 : index
      %18 = vector.load %arg7[%c0_8, %c0_9, %c0_10, %c0_11, %c0_12] : memref<1x1x2x8x8xf32, #tpu.memory_space<vmem>>, vector<1x1x2x8x8xf32>
      %19 = vector.shape_cast %18 : vector<1x1x2x8x8xf32> to vector<2x8x8xf32>
      %20 = vector.shape_cast %17 : vector<2x8x8xf32> to vector<1x1x2x8x8xf32>
      tpu.vector_store %arg7[%c0_8, %c0_9, %c0_10, %c0_11, %c0_12], %20 {strides = array<i32>} : memref<1x1x2x8x8xf32, #tpu.memory_space<vmem>>, vector<1x1x2x8x8xf32>,
    } else {
    }
    return
  }
  func.func @transform_0(%arg0: i32, %arg1: i32, %arg2: i32, %arg3: i32) -> (i32, i32, i32, i32, i32) {
    %c0_i32 = arith.constant 0 : i32
    %c0_i32_0 = arith.constant 0 : i32
    %c0_i32_1 = arith.constant 0 : i32
    return %arg0, %arg1, %c0_i32, %arg2, %c0_i32_0 : i32, i32, i32, i32, i32
  }
  func.func @transform_1(%arg0: i32, %arg1: i32, %arg2: i32, %arg3: i32) -> (i32, i32, i32, i32) {
    %c0_i32 = arith.constant 0 : i32
    %c0_i32_0 = arith.constant 0 : i32
    return %arg0, %arg1, %arg3, %c0_i32 : i32, i32, i32, i32
  }
  func.func @transform_2(%arg0: i32, %arg1: i32, %arg2: i32, %arg3: i32) -> (i32, i32, i32, i32) {
    %c0_i32 = arith.constant 0 : i32
    %c0_i32_0 = arith.constant 0 : i32
    return %arg0, %arg1, %arg3, %c0_i32 : i32, i32, i32, i32
  }
  func.func @transform_3(%arg0: i32, %arg1: i32, %arg2: i32, %arg3: i32) -> (i32, i32, i32, i32, i32) {
    %c0_i32 = arith.constant 0 : i32
    %c0_i32_0 = arith.constant 0 : i32
    %c0_i32_1 = arith.constant 0 : i32
    return %arg0, %arg1, %c0_i32, %arg2, %c0_i32_0 : i32, i32, i32, i32, i32
  }
}

module attributes {stable_mosaic.version = 11 : i64} {
  func.func @linear_kernel(%arg0: i32, %arg1: i32, %arg2: i32, %arg3: memref<16x32xf32, #tpu.memory_space<vmem>>, %arg4: memref<32x32xf32, #tpu.memory_space<vmem>>, %arg5: memref<1x32xf32, #tpu.memory_space<vmem>>, %arg6: memref<16x32xf32, #tpu.memory_space<vmem>>, %arg7: memref<16x32xf32, #tpu.memory_space<vmem>>) attributes {dimension_semantics = [#tpu.dimension_semantics<parallel>, #tpu.dimension_semantics<parallel>, #tpu.dimension_semantics<arbitrary>], iteration_bounds = array<i64: 1, 1, 1>, scalar_prefetch = 0 : i64, scratch_operands = 1 : i64, tpu.core_type = #tpu.core_type<tc>, window_params = [{transform_indices = @transform_0, window_bounds = array<i64: 16, 32>}, {transform_indices = @transform_1, window_bounds = array<i64: 32, 32>}, {transform_indices = @transform_2, window_bounds = array<i64: 1, 32>}, {transform_indices = @transform_3, window_bounds = array<i64: 16, 32>}]} {
    %c0_i32 = arith.constant 0 : i32
    %0 = arith.cmpi eq, %arg2, %c0_i32 : i32
    %1 = arith.extui %0 : i1 to i32
    %c0_i32_0 = arith.constant 0 : i32
    %2 = arith.cmpi ne, %1, %c0_i32_0 : i32
    scf.if %2 {
      %cst_10 = arith.constant 0.000000e+00 : f32
      %12 = vector.broadcast %cst_10 : f32 to vector<16x32xf32>
      %c0_11 = arith.constant 0 : index
      %c0_12 = arith.constant 0 : index
      %13 = vector.load %arg7[%c0_11, %c0_12] : memref<16x32xf32, #tpu.memory_space<vmem>>, vector<16x32xf32>
      tpu.vector_store %arg7[%c0_11, %c0_12], %12 {strides = array<i32>} : memref<16x32xf32, #tpu.memory_space<vmem>>, vector<16x32xf32>,
    } else {
    }
    %c0 = arith.constant 0 : index
    %c0_1 = arith.constant 0 : index
    %3 = vector.load %arg7[%c0, %c0_1] : memref<16x32xf32, #tpu.memory_space<vmem>>, vector<16x32xf32>
    %c0_2 = arith.constant 0 : index
    %c0_3 = arith.constant 0 : index
    %4 = vector.load %arg3[%c0_2, %c0_3] : memref<16x32xf32, #tpu.memory_space<vmem>>, vector<16x32xf32>
    %c0_4 = arith.constant 0 : index
    %c0_5 = arith.constant 0 : index
    %5 = vector.load %arg4[%c0_4, %c0_5] : memref<32x32xf32, #tpu.memory_space<vmem>>, vector<32x32xf32>
    %cst = arith.constant dense<0.000000e+00> : vector<16x32xf32>
    %6 = tpu.matmul %4, %5, %cst {dimension_numbers = #tpu.dot_dimension_numbers<[1], [1], [0], [0], [0, 0, 1, 0], [], []>} : vector<16x32xf32>, vector<32x32xf32>, vector<16x32xf32> -> vector<16x32xf32>
    %7 = arith.addf %3, %6 : vector<16x32xf32>
    %c0_6 = arith.constant 0 : index
    %c0_7 = arith.constant 0 : index
    %8 = vector.load %arg7[%c0_6, %c0_7] : memref<16x32xf32, #tpu.memory_space<vmem>>, vector<16x32xf32>
    tpu.vector_store %arg7[%c0_6, %c0_7], %7 {strides = array<i32>} : memref<16x32xf32, #tpu.memory_space<vmem>>, vector<16x32xf32>,
    %c0_i32_8 = arith.constant 0 : i32
    %9 = arith.cmpi eq, %arg2, %c0_i32_8 : i32
    %10 = arith.extui %9 : i1 to i32
    %c0_i32_9 = arith.constant 0 : i32
    %11 = arith.cmpi ne, %10, %c0_i32_9 : i32
    scf.if %11 {
      %c0_10 = arith.constant 0 : index
      %c0_11 = arith.constant 0 : index
      %12 = vector.load %arg7[%c0_10, %c0_11] : memref<16x32xf32, #tpu.memory_space<vmem>>, vector<16x32xf32>
      %c0_12 = arith.constant 0 : index
      %c0_13 = arith.constant 0 : index
      %13 = vector.load %arg5[%c0_12, %c0_13] : memref<1x32xf32, #tpu.memory_space<vmem>>, vector<1x32xf32>
      %14 = vector.broadcast %13 : vector<1x32xf32> to vector<16x32xf32>
      %15 = arith.addf %12, %14 : vector<16x32xf32>
      %c0_14 = arith.constant 0 : index
      %c0_15 = arith.constant 0 : index
      %16 = vector.load %arg6[%c0_14, %c0_15] : memref<16x32xf32, #tpu.memory_space<vmem>>, vector<16x32xf32>
      tpu.vector_store %arg6[%c0_14, %c0_15], %15 {strides = array<i32>} : memref<16x32xf32, #tpu.memory_space<vmem>>, vector<16x32xf32>,
    } else {
    }
    return
  }
  func.func @transform_0(%arg0: i32, %arg1: i32, %arg2: i32) -> (i32, i32) {
    %c0_i32 = arith.constant 0 : i32
    return %arg0, %arg2 : i32, i32
  }
  func.func @transform_1(%arg0: i32, %arg1: i32, %arg2: i32) -> (i32, i32) {
    %c0_i32 = arith.constant 0 : i32
    return %arg1, %arg2 : i32, i32
  }
  func.func @transform_2(%arg0: i32, %arg1: i32, %arg2: i32) -> (i32, i32) {
    %c0_i32 = arith.constant 0 : i32
    %c0_i32_0 = arith.constant 0 : i32
    return %c0_i32, %arg1 : i32, i32
  }
  func.func @transform_3(%arg0: i32, %arg1: i32, %arg2: i32) -> (i32, i32) {
    %c0_i32 = arith.constant 0 : i32
    return %arg0, %arg1 : i32, i32
  }
}

</mosaic_0001>

<bundles_post_ra>
// kernel: gqa_forward.3
= control target key start
LH: loop header
LB: loop body
LE: loop exit
PB: predicated region body
PF: predicated region fallthrough
CT: control target
= control target key end

     0   :  { %vm33_vm0 = vcmask 261120   ;;  %vm18_vm1 = vcmask 523264   ;;  %v129_v1 = vmov 0.0   ;;  %s213_s1 = inlined_call_operand.vmem [shape: f32[64,32], index: 1, kind: input, shape index: {}]   ;;  %s214_s2 = inlined_call_operand.vmem [shape: f32[1,64], index: 2, kind: input, shape index: {}]   ;;  %s215_s0 = inlined_call_operand.vmem [shape: f32[16,32], index: 0, kind: input, shape index: {}]   ;;  %s216_s3 = inlined_call_operand.vmem [shape: f32[16,64], index: 3, kind: output, shape index: {}]  }
   0x1   :  { %v32_v0 = vld [vmem:[%s213_s1 + $0x38] sm:$0xff]  ;;  %19 = vst.msk [vmem:[#allocation2] sm:$0xff] %vm18_vm1, %v129_v1  ;;  %v31_v2 = vld [vmem:[%s213_s1 + $0x30] sm:$0xff]  ;;  %v30_v3 = vld [vmem:[%s213_s1 + $0x28] sm:$0xff] }
   0x2   :  { %109 = vmatpush.xpose.msk.msra.mxu0 %vm33_vm0, %v32_v0  ;;  %119 = vmatpush.xpose.msk.msra.mxu1 %vm33_vm0, %v32_v0  ;;  %20 = vst.msk [vmem:[#allocation2 + $0x8] sm:$0xff] %vm18_vm1, %v129_v1  ;;  %v29_v4 = vld [vmem:[%s213_s1 + $0x20] sm:$0xff]  ;;  %v28_v5 = vld [vmem:[%s213_s1 + $0x18] sm:$0xff]  ;;  %v27_v6 = vld [vmem:[%s213_s1 + $0x10] sm:$0xff] }
   0x3   :  { %v26_v7 = vld [vmem:[%s213_s1 + $0x8] sm:$0xff]  ;;  %v25_v8 = vld [vmem:[%s213_s1] sm:$0xff] }
   0x4   :  { %v23_v9 = vld [vmem:[%s215_s0] sm:$0xff]  ;;  %v24_v10 = vld [vmem:[%s215_s0 + $0x8] sm:$0xff] }
   0x5   :  { %v128_v17 = vld [vmem:[%s214_s2] ss:$0 sm:$0xff] }
   0x6   :  { %110 = vmatpush.xpose.msk.msra.mxu0 %vm33_vm0, %v31_v2  ;;  %120 = vmatpush.xpose.msk.msra.mxu1 %vm33_vm0, %v31_v2 }
   0x8   :  { %v21_v11 = vld [vmem:[#allocation2] sm:$0xff] }
   0x9   :  { %v22_v12 = vld [vmem:[#allocation2 + $0x8] sm:$0xff] }
   0xa   :  { %111 = vmatpush.xpose.msk.msra.mxu0 %vm33_vm0, %v30_v3  ;;  %121 = vmatpush.xpose.msk.msra.mxu1 %vm33_vm0, %v30_v3 }
   0xe   :  { %112 = vmatpush.xpose.msk.msra.mxu0 %vm33_vm0, %v29_v4  ;;  %122 = vmatpush.xpose.msk.msra.mxu1 %vm33_vm0, %v29_v4 }
  0x12   :  { %113 = vmatpush.xpose.msk.msra.mxu0 %vm33_vm0, %v28_v5  ;;  %123 = vmatpush.xpose.msk.msra.mxu1 %vm33_vm0, %v28_v5 }
  0x16   :  { %114 = vmatpush.xpose.msk.msra.mxu0 %vm33_vm0, %v27_v6  ;;  %124 = vmatpush.xpose.msk.msra.mxu1 %vm33_vm0, %v27_v6 }
  0x1a   :  { %115 = vmatpush.xpose.msk.msra.mxu0 %vm33_vm0, %v26_v7  ;;  %125 = vmatpush.xpose.msk.msra.mxu1 %vm33_vm0, %v26_v7 }
  0x1e   :  { %116 = vmatpush.xpose.msk.msra.mxu0 %vm33_vm0, %v25_v8  ;;  %126 = vmatpush.xpose.msk.msra.mxu1 %vm33_vm0, %v25_v8 }
  0x21   :  { %117 = vmatmul.msk.f32.vlgmr.msra.gmra.mxu0 %vm33_vm0, %v23_v9  ;;  %118 = vmatmul.msk.f32.vlgmr.msra.gmra.mxu1 %vm33_vm0, %v24_v10 }
  0x9e   :  { %v81_v13 = vpop.f32.mrf.mxu0  ;;  %v84_v14 = vpop.f32.mrf.mxu1 }
  0x9f   :  { %v87_v15 = vadd.f32 %v81_v13, %v21_v11  ;;  %v88_v16 = vadd.f32 %v84_v14, %v22_v12 }
  0xa1   :  { %90 = vst.msk [vmem:[#allocation2] sm:$0xff] %vm18_vm1, %v87_v15 }
  0xa2   :  { %91 = vst.msk [vmem:[#allocation2 + $0x8] sm:$0xff] %vm18_vm1, %v88_v16 }
  0xa8   :  { %v95_v18 = vld [vmem:[#allocation2] sm:$0xff] }
  0xa9   :  { %v101_v19 = vadd.f32 %v128_v17, %v95_v18  ;;  %v96_v20 = vld [vmem:[#allocation2 + $0x8] sm:$0xff] }
  0xaa   :  { %v102_v21 = vadd.f32 %v128_v17, %v96_v20 }
  0xab   :  { %103 = vst.msk [vmem:[%s216_s3] sm:$0xff] %vm18_vm1, %v101_v19 }
  0xac   :  { %104 = vst.msk [vmem:[%s216_s3 + $0x8] sm:$0xff] %vm18_vm1, %v102_v21 }

// kernel: gqa_forward.4
= control target key start
LH: loop header
LB: loop body
LE: loop exit
PB: predicated region body
PF: predicated region fallthrough
CT: control target
= control target key end

     0   :  { %s840_s12 = smov 0   ;;  %s842_s13 = smov 0   ;;  %s935_s0 = inlined_call_operand.vmem [shape: f32[2,2,2,8,8], index: 0, kind: input, shape index: {}]   ;;  %s936_s1 = inlined_call_operand.vmem [shape: f32[2,2,8,8], index: 1, kind: input, shape index: {}]   ;;  %s937_s2 = inlined_call_operand.vmem [shape: f32[2,2,8,8], index: 2, kind: input, shape index: {}]   ;;  %s938_s3 = inlined_call_operand.vmem [shape: f32[2,2,2,8,8], index: 3, kind: output, shape index: {}]  }
   0x1   :  { %s844_s14 = smov 0   ;;  %s846_s15 = smov 0  }
   0x2   :  { %s848_s16 = smov 0  }
   0x3 LB: > { %s35_s17 = sadd.s32 1, %s807_s14  ;;  %s39_s18 = sadd.s32 1, %s811_s15  ;;  %s815_s16 = sphi %s848_s16, %s13_s16   ;;  %s811_s15 = sphi %s846_s15, %s942_s15   ;;  %s807_s14 = sphi %s844_s14, %s941_s14   ;;  %s803_s13 = sphi %s842_s13, %s940_s13   ;;  %s799_s12 = sphi %s840_s12, %s939_s12  }
   0x4   : > { %p37_p0 = scmp.ge.s32.totalorder %s35_s17, 2  ;;  %p699_p1 = scmp.ge.s32.totalorder %s815_s16, 1 }
   0x5   : > { %p218_p2 = scmp.lt.s32.totalorder %s815_s16, 5 }
   0x6   : > { %s944_s17 = smov (%p37_p0, %s35_s17), 0  ;;  %s946_s18 = smov (!%p37_p0, %s39_s18), %s811_s15 }
   0x7   : > { %p219_p3 = pnand %p699_p1, %p218_p2  ;;  %p41_p4 = scmp.ge.s32.totalorder %s946_s18, 2 }
   0x8   : > { %p278_p5 = scmp.lt.s32.totalorder (!%p219_p3), %s803_s13, 1  ;;  %p280_p6 = scmp.lt.s32.totalorder (!%p219_p3), %s799_s12, 1 }
   0x9   : > { %s948_s18 = smov (%p41_p4, %s946_s18), 0  ;;  %222 = sbr.rel (%p219_p3) target bundleno = 681 (0x2a9), region = 32 }
   0xe   : > { %s950_s13 = smov (!%p278_p5, %s803_s13), 1  ;;  %s952_s12 = smov (!%p280_p6, %s799_s12), 1  ;;  %vm333_vm0 = vcmask 64512   ;;  %vm328_vm1 = vcmask 7168   ;;  %v817_v3 = vmov -1e+30   ;;  %v382_v4 = vlaneseq }
   0xf   : > { %s703_s19 = sshll.u32 %s950_s13, 1  ;;  %s701_s20 = sshll.u32 %s950_s13, 2  ;;  %330 = vst.msk [vmem:[#allocation2 + $0x8] sm:$0xff] %vm328_vm1, %v817_v3  ;;  %v818_v15 = vmov 0   ;;  %v819_v16 = vmov 0.0  }
  0x10   : > { %s870_s21 = sadd.s32 %s703_s19, %s952_s12  ;;  %s700_s22 = sshll.u32 %s952_s12, 1  ;;  %329 = vst.msk [vmem:[#allocation2] sm:$0xff] %vm328_vm1, %v817_v3  ;;  %v383_v5 = vshrl.u32 %v382_v4, 7  ;;  %v387_v6 = vand.u32 127, %v382_v4  ;;  %762 = vset.pattern.permute.xlu1 %v818_v15  ;;  %763 = vset.pattern.permute.xlu0 %v818_v15 }
  0x11   : > { %s704_s23 = sshll.u32 %s870_s21, 3  ;;  %s873_s24 = sadd.s32 %s701_s20, %s700_s22  ;;  %764 = vset.pattern.permute.xlu2 %v818_v15  ;;  %335 = vst.msk [vmem:[#allocation4 + $0x8] sm:$0xff] %vm333_vm0, %v819_v16 }
  0x12   : > { %s300_s27 = scalar_lea.vmem %s936_s1, %s704_s23  ;;  %s702_s28 = sshll.u32 %s873_s24, 3  ;;  %vm390_vm2 = vcmp.le.s32.totalorder %v387_v6, %v383_v5  ;;  %331 = vst.msk [vmem:[#allocation3] sm:$0xff] %vm328_vm1, %v819_v16 }
  0x13   : > { %v345_v0 = vld [vmem:[%s300_s27] sm:$0xff]  ;;  %s289_s4 = scalar_lea.vmem %s935_s0, %s702_s28  ;;  %332 = vst.msk [vmem:[#allocation3 + $0x8] sm:$0xff] %vm328_vm1, %v819_v16  ;;  %s311_s7 = scalar_lea.vmem %s937_s2, %s704_s23 }
  0x14   : > { %717 = vmatpush.xpose.msk.msra.mxu2 %vm333_vm0, %v345_v0  ;;  %v344_v1 = vld [vmem:[%s289_s4 + $0x8] sm:$0xff]  ;;  %710 = vmatpush.xpose.msk.msra.mxu0 %vm333_vm0, %v345_v0  ;;  %v343_v2 = vld [vmem:[%s289_s4] sm:$0xff]  ;;  %334 = vst.msk [vmem:[#allocation4] sm:$0xff] %vm333_vm0, %v819_v16  ;;  %s323_s10 = scalar_lea.vmem %s938_s3, %s702_s28 }
  0x15   : > { %v346_v29 = vld [vmem:[%s311_s7] sm:$0xff] }
  0x16   : > { %v394_v17 = vld [vmem:[#allocation2 + $0x8] sm:$0xff]  ;;  %718 = vmatpush.msra.mxu3 %v346_v29  ;;  %475 = vmatpush.msra.mxu1 %v346_v29 }
  0x17   : > { %712 = vmatmul.msk.f32.vlgmr.msra.gmra.mxu2 %vm333_vm0, %v344_v1  ;;  %711 = vmatmul.msk.f32.vlgmr.msra.gmra.mxu0 %vm333_vm0, %v343_v2  ;;  %v393_v21 = vld [vmem:[#allocation2] sm:$0xff] }
  0x18   : > { %v441_v44 = vld [vmem:[#allocation4 + $0x8] sm:$0xff] }
  0x19   : > { %v425_v40 = vld [vmem:[#allocation3] sm:$0xff] }
  0x1a   : > { %v426_v46 = vld [vmem:[#allocation3 + $0x8] sm:$0xff] }
  0x1b   : > { %v440_v47 = vld [vmem:[#allocation4] sm:$0xff] }
  0x94   : > { %v374_v8 = vpop.f32.mrf.mxu0 }
  0x95   : > { %v380_v11 = vmul.f32 0.35355338, %v374_v8 }
  0x97   : > { %v391_v13 = vsel %vm390_vm2, %v380_v11, -1e+30 }
  0x98   : > { %v395_v14 = vsel %vm333_vm0, %v391_v13, -inf }
  0x9a   : > { %v377_v7 = vpop.f32.mrf.mxu2 }
  0x9b   : > { %v381_v9 = vmul.f32 0.35355338, %v377_v7 }
  0x9d   : > { %v392_v10 = vsel %vm390_vm2, %v381_v9, -1e+30 }
  0x9e   : > { %v398_v12 = vsel %vm333_vm0, %v392_v10, -inf }
  0x9f   : > { %399 = vmax.xlane.f32.xlu0 %v398_v12 }
  0xa7   : > { %396 = vmax.xlane.f32.xlu0 %v395_v14 }
 0x112   : > { %v400_v18 = vpop.xlane.xlu0 %399 }
 0x113   : > { %v402_v19 = vmax.f32 %v394_v17, %v400_v18 }
 0x115   : > { %488 = vst.msk [vmem:[#allocation2 + $0x8] sm:$0xff] %vm328_vm1, %v402_v19  ;;  %416 = vperm.xlu1 %762, %v402_v19   ;;  %v404_v20 = vsub.f32 %v394_v17, %v402_v19 }
 0x117   : > { %v407_v22 = vmul.f32 1.442695, %v404_v20 }
 0x119   : > { %765 = vpow2.f32 %v407_v22 }
 0x11a   : > { %v397_v23 = vpop.xlane.xlu0 %396 }
 0x11b   : > { %v401_v24 = vmax.f32 %v393_v21, %v397_v23 }
 0x11d   : > { %v403_v25 = vsub.f32 %v393_v21, %v401_v24  ;;  %487 = vst.msk [vmem:[#allocation2] sm:$0xff] %vm328_vm1, %v401_v24  ;;  %411 = vperm.xlu1 %762, %v401_v24  }
 0x11f   : > { %v405_v26 = vmul.f32 1.442695, %v403_v25  ;;  %v766_v27 = vpop.eup %765 }
 0x120   : > { %v428_v51 = vmul.f32 %v766_v27, %v426_v46 }
 0x121   : > { %767 = vpow2.f32 %v405_v26 }
 0x125   : > { %449 = vperm.xlu1 %762, %v766_v27  }
 0x127   : > { %v768_v28 = vpop.eup %767 }
 0x128   : > { %444 = vperm.xlu0 %763, %v768_v28   ;;  %v427_v41 = vmul.f32 %v768_v28, %v425_v40 }
 0x187   : > { %v417_v30 = vpop.permute.xlu1 %416 }
 0x188   : > { %v420_v31 = vsub.f32 %v392_v10, %v417_v30 }
 0x18a   : > { %v423_v32 = vmul.f32 1.442695, %v420_v31 }
 0x18c   : > { %769 = vpow2.f32 %v423_v32 }
 0x18f   : > { %v412_v33 = vpop.permute.xlu1 %411 }
 0x190   : > { %v419_v34 = vsub.f32 %v391_v13, %v412_v33 }
 0x192   : > { %v770_v35 = vpop.eup %769  ;;  %v421_v36 = vmul.f32 1.442695, %v419_v34 }
 0x193   : > { %714 = vmatmul.msk.f32.vlgmr.msra.gmra.mxu3 %vm333_vm0, %v770_v35  ;;  %v432_v39 = vsel %vm333_vm0, %v770_v35, 0.0 }
 0x194   : > { %771 = vpow2.f32 %v421_v36 }
 0x197   : > { %v450_v45 = vpop.permute.xlu1 %449 }
 0x198   : > { %v453_v49 = vmul.f32 %v450_v45, %v441_v44 }
 0x19a   : > { %v772_v37 = vpop.eup %771  ;;  %v445_v48 = vpop.permute.xlu0 %444 }
 0x19b   : > { %713 = vmatmul.msk.f32.vlgmr.msra.gmra.mxu1 %vm333_vm0, %v772_v37  ;;  %v429_v38 = vsel %vm333_vm0, %v772_v37, 0.0  ;;  %v452_v52 = vmul.f32 %v445_v48, %v440_v47 }
 0x19c   : > { %430 = vadd.xlane.f32.xlu2 %v429_v38 }
 0x1a4   : > { %433 = vadd.xlane.f32.xlu2 %v432_v39 }
 0x20f   : > { %v431_v42 = vpop.xlane.xlu2 %430 }
 0x210   : > { %v435_v43 = vadd.f32 %v431_v42, %v427_v41 }
 0x212   : > { %438 = vst.msk [vmem:[#allocation3] sm:$0xff] %vm328_vm1, %v435_v43 }
 0x216   : > { %v480_v50 = vpop.f32.mrf.mxu3 }
 0x217   : > { %v484_v53 = vadd.f32 %v480_v50, %v453_v49  ;;  %v434_v54 = vpop.xlane.xlu2 %433 }
 0x218   : > { %v436_v55 = vadd.f32 %v434_v54, %v428_v51  ;;  %v477_v56 = vpop.f32.mrf.mxu1 }
 0x219   : > { %486 = vst.msk [vmem:[#allocation4 + $0x8] sm:$0xff] %vm333_vm0, %v484_v53  ;;  %v483_v57 = vadd.f32 %v477_v56, %v452_v52  ;;  %v492_v58 = vld [vmem:[#allocation3] sm:$0xff] }
 0x21a   : > { %439 = vst.msk [vmem:[#allocation3 + $0x8] sm:$0xff] %vm328_vm1, %v436_v55  ;;  %773 = vrcp.f32 %v492_v58  ;;  %v505_v63 = vand.u32 2147483648, %v492_v58  ;;  %v503_v1 = vand.u32 2147483647, %v492_v58  ;;  %vm499_vm4 = vweird.f32 %v492_v58 }
 0x21b   : > { %485 = vst.msk [vmem:[#allocation4] sm:$0xff] %vm333_vm0, %v483_v57 }
 0x21c   : > { %v506_v4 = vor.u32 1.1754944e-38, %v505_v63  ;;  %vm504_vm6 = vcmp.eq.f32.partialorder %v503_v1, 8.507059e+37 }
 0x220   : > { %v774_v59 = vpop.eup %773  ;;  %v523_v19 = vld [vmem:[#allocation4 + $0x8] sm:$0xff] }
 0x221   : > { %v495_v60 = vmul.f32 %v774_v59, %v492_v58  ;;  %v493_v61 = vld [vmem:[#allocation3 + $0x8] sm:$0xff]  ;;  %vm500_vm3 = vweird.f32 %v774_v59 }
 0x222   : > { %775 = vrcp.f32 %v493_v61  ;;  %vm501_vm5 = vmor %vm499_vm4, %vm500_vm3  ;;  %v519_v9 = vand.u32 2147483648, %v493_v61  ;;  %v517_v11 = vand.u32 2147483647, %v493_v61  ;;  %vm513_vm8 = vweird.f32 %v493_v61  ;;  %v522_v16 = vld [vmem:[#allocation4] sm:$0xff] }
 0x223   : > { %v496_v62 = vsub.f32 1.0, %v495_v60 }
 0x224   : > { %v520_v13 = vor.u32 1.1754944e-38, %v519_v9  ;;  %vm518_vm10 = vcmp.eq.f32.partialorder %v517_v11, 8.507059e+37 }
 0x225   : > { %v497_v0 = vmul.f32 %v774_v59, %v496_v62 }
 0x227   : > { %v498_v2 = vadd.f32 %v774_v59, %v497_v0 }
 0x228   : > { %v776_v3 = vpop.eup %775 }
 0x229   : > { %v502_v5 = vsel %vm501_vm5, %v774_v59, %v498_v2  ;;  %v509_v6 = vmul.f32 %v776_v3, %v493_v61  ;;  %vm514_vm7 = vweird.f32 %v776_v3 }
 0x22a   : > { %v507_v7 = vsel %vm504_vm6, %v506_v4, %v502_v5  ;;  %vm515_vm9 = vmor %vm513_vm8, %vm514_vm7 }
 0x22b   : > { %526 = vperm.xlu2 %764, %v507_v7   ;;  %v510_v8 = vsub.f32 1.0, %v509_v6 }
 0x22d   : > { %v511_v10 = vmul.f32 %v776_v3, %v510_v8 }
 0x22f   : > { %v512_v12 = vadd.f32 %v776_v3, %v511_v10 }
 0x231   : > { %v516_v14 = vsel %vm515_vm9, %v776_v3, %v512_v12 }
 0x232   : > { %v521_v15 = vsel %vm518_vm10, %v520_v13, %v516_v14 }
 0x233   : > { %531 = vperm.xlu1 %762, %v521_v15  }
 0x285   : > { %v527_v17 = vpop.permute.xlu2 %526 }
 0x286   : > { %v534_v18 = vmul.f32 %v527_v17, %v522_v16 }
 0x288   : > { %537 = vst.msk [vmem:[%s323_s10] sm:$0xff] %vm333_vm0, %v534_v18 }
 0x2a5   : > { %v532_v20 = vpop.permute.xlu1 %531 }
 0x2a6   : > { %v535_v21 = vmul.f32 %v532_v20, %v523_v19 }
 0x2a8   : > { %538 = vst.msk [vmem:[%s323_s10 + $0x8] sm:$0xff] %vm333_vm0, %v535_v21 }
 0x2a9 PF: > { %s13_s16 = sadd.s32 1, %s815_s16   ;;  %s939_s12 = smov %s807_s14 }
 0x2aa   : > { %p10_p7 = scmp.ge.s32.totalorder %s13_s16, 6   ;;  %s940_s13 = smov %s811_s15 }
 0x2ab   : > { %s941_s14 = smov %s944_s17  ;;  %s942_s15 = smov %s948_s18 }
 0x2ac   :  { %12 = sbr.rel (!%p10_p7) target bundleno = 3 (0x3), region = 80 }

// kernel: gqa_forward.5
= control target key start
LH: loop header
LB: loop body
LE: loop exit
PB: predicated region body
PF: predicated region fallthrough
CT: control target
= control target key end

     0   :  { %vm19_vm0 = vcmask 261120   ;;  %v148_v1 = vmov 0.0   ;;  %s212_s0 = inlined_call_operand.vmem [shape: f32[16,32], index: 0, kind: input, shape index: {}]   ;;  %s213_s1 = inlined_call_operand.vmem [shape: f32[32,32], index: 1, kind: input, shape index: {}]   ;;  %s214_s2 = inlined_call_operand.vmem [shape: f32[1,32], index: 2, kind: input, shape index: {}]   ;;  %s215_s3 = inlined_call_operand.hbm [shape: f32[16,32], index: 3, kind: output, shape index: {}]  }
   0x1   :  { %v29_v0 = vld [vmem:[%s213_s1 + $0x18] sm:$0xff]  ;;  %20 = vst.msk [vmem:[#allocation2] sm:$0xff] %vm19_vm0, %v148_v1  ;;  %v28_v2 = vld [vmem:[%s213_s1 + $0x10] sm:$0xff] }
   0x2   :  { %107 = vmatpush.xpose.msk.msra.mxu0 %vm19_vm0, %v29_v0  ;;  %113 = vmatpush.xpose.msk.msra.mxu1 %vm19_vm0, %v29_v0  ;;  %21 = vst.msk [vmem:[#allocation2 + $0x8] sm:$0xff] %vm19_vm0, %v148_v1 }
   0x3   :  { %8 = vsyncpa [#allocation4], 0  ;;  %v27_v3 = vld [vmem:[%s213_s1 + $0x8] sm:$0xff]  ;;  %v26_v4 = vld [vmem:[%s213_s1] sm:$0xff]  ;;  %s149_s25 = smov [#allocation3]   ;;  %s95_s28 = sshll.u32 %s215_s3, 4  ;;  %s96_s28 = int_to_ptr.hbm [resolvable:$true] %s95_s28 }
   0x4   :  { %v24_v5 = vld [vmem:[%s212_s0] sm:$0xff]  ;;  %v25_v6 = vld [vmem:[%s212_s0 + $0x8] sm:$0xff]  ;;  %s93_s0 = sshll.u32 %s149_s25, 4  ;;  %s150_s29 = smov 128   ;;  %s94_s0 = int_to_ptr.vmem [resolvable:$true] %s93_s0 }
   0x5   :  { %v121_v13 = vld [vmem:[%s214_s2] ss:$0 sm:$0xff]  ;;  %s151_s30 = smov 8  }
   0x6   :  { %108 = vmatpush.xpose.msk.msra.mxu0 %vm19_vm0, %v28_v2  ;;  %114 = vmatpush.xpose.msk.msra.mxu1 %vm19_vm0, %v28_v2 }
   0x8   :  { %v22_v7 = vld [vmem:[#allocation2] sm:$0xff] }
   0x9   :  { %v23_v8 = vld [vmem:[#allocation2 + $0x8] sm:$0xff] }
   0xa   :  { %109 = vmatpush.xpose.msk.msra.mxu0 %vm19_vm0, %v27_v3  ;;  %115 = vmatpush.xpose.msk.msra.mxu1 %vm19_vm0, %v27_v3 }
   0xe   :  { %110 = vmatpush.xpose.msk.msra.mxu0 %vm19_vm0, %v26_v4  ;;  %116 = vmatpush.xpose.msk.msra.mxu1 %vm19_vm0, %v26_v4 }
  0x11   :  { %111 = vmatmul.msk.f32.vlgmr.msra.gmra.mxu0 %vm19_vm0, %v24_v5  ;;  %112 = vmatmul.msk.f32.vlgmr.msra.gmra.mxu1 %vm19_vm0, %v25_v6 }
  0x8e   :  { %v66_v9 = vpop.f32.mrf.mxu0  ;;  %v69_v10 = vpop.f32.mrf.mxu1 }
  0x8f   :  { %v72_v11 = vadd.f32 %v66_v9, %v22_v7  ;;  %v73_v12 = vadd.f32 %v69_v10, %v23_v8 }
  0x91   :  { %74 = vst.msk [vmem:[#allocation2] sm:$0xff] %vm19_vm0, %v72_v11 }
  0x92   :  { %75 = vst.msk [vmem:[#allocation2 + $0x8] sm:$0xff] %vm19_vm0, %v73_v12 }
  0x98   :  { %v79_v14 = vld [vmem:[#allocation2] sm:$0xff] }
  0x99   :  { %v80_v15 = vld [vmem:[#allocation2 + $0x8] sm:$0xff]  ;;  %v85_v16 = vadd.f32 %v121_v13, %v79_v14 }
  0x9a   :  { %v86_v17 = vadd.f32 %v121_v13, %v80_v15 }
  0x9b   :  { %87 = vst.msk [vmem:[#allocation3] sm:$0xff] %vm19_vm0, %v85_v16 }
  0x9c   :  { %88 = vst.msk [vmem:[#allocation3 + $0x8] sm:$0xff] %vm19_vm0, %v86_v17 }
  0x9d   :  { %101 = dma.vmem_to_hbm [thread:$0]  %s94_s0, 256, %s96_s28, [#allocation4], %s150_s29, %s150_s29, %s151_s30  }
  0x9e   :  { %146 = dma.done.wait [#allocation4], 256  }
  0x9f   :  { %147 = vsyncadd [#allocation4], 4294967040 }
  0xa0   :  { %106 = vsyncpa [#allocation4], 1 }

</bundles_post_ra>
